<compile_context>
chip_gen: v5e
topology: v5e:2x2
jax: 0.10.0
libtpu: 0.0.40
codegen_flags: <defaults>
</compile_context>

<pallas_src>
import functools

import jax
import jax.numpy as jnp
from jax.experimental import pallas as pl
from jax.experimental.pallas import tpu as pltpu

FS = 7                 # grid size S
NB = 2                 # boxes per cell B
NC = 20                # classes C
NFEAT = 5 * NB + NC    # 30 features per cell
LAMBDA_COORD = 5.0
LAMBDA_NOOBJ = 0.5
INV_S = 1.0 / float(FS)

# Cells (rows) per tile.  A (R, 30) f32 block is lane-padded to (R, 128) in
# VMEM, so R=4096 -> 2 MiB per buffer, ~8 MiB double-buffered for both inputs
# plus a few MiB of in-kernel temporaries: comfortably inside the 32 MiB
# default scoped-VMEM limit on every generation, while each grid step still
# moves ~1 MB of useful HBM data (well past the tile-size knee of the HBM
# roofline).
R_MAX = 4096


def _loss_kernel(pred_ref, targ_ref, out_ref, *, rows, total_cells,
                 tiles_per_split):
    c = pl.program_id(0)
    i = pl.program_id(1)

    @pl.when(i == 0)
    def _init():
        out_ref[...] = jnp.zeros_like(out_ref)

    # (rows, 30) natural-layout tile -> (30, rows) feature-major: features on
    # sublanes, cells on lanes, so every subsequent op is lane-dense.  Cast
    # first so bf16 inputs only cost bf16 HBM traffic.
    p = jnp.transpose(pred_ref[...].astype(jnp.float32))   # (30, rows)
    t = jnp.transpose(targ_ref[...].astype(jnp.float32))

    conf_t = t[4:5, :]                 # (1, rows) target conf of box 0
    has_obj = conf_t > 0.0
    no_obj = conf_t == 0.0

    # One slab-wide squared diff, reused by the no-object and class terms.
    d2 = (p - t) ** 2                                      # (30, rows)
    noobj_sq = d2[4:5, :] + d2[9:10, :]
    cls_sq = jnp.sum(d2[10:, :], axis=0, keepdims=True)    # (1, rows)

    # ---- IoU of both predicted boxes vs. target box 0 (feature-major) ----
    def xyxy(b5):      # b5: (5, rows) rows = cx, cy, w, h, conf
        cx = b5[0:1, :] * INV_S
        cy = b5[1:2, :] * INV_S
        hw = 0.5 * b5[2:3, :]
        hh = 0.5 * b5[3:4, :]
        return cx - hw, cy - hh, cx + hw, cy + hh

    tx1, ty1, tx2, ty2 = xyxy(t[0:5, :])
    t_area = (tx2 - tx1) * (ty2 - ty1)

    def iou(b5):
        px1, py1, px2, py2 = xyxy(b5)
        p_area = (px2 - px1) * (py2 - py1)
        iw = jnp.maximum(jnp.minimum(px2, tx2) - jnp.maximum(px1, tx1), 0.0)
        ih = jnp.maximum(jnp.minimum(py2, ty2) - jnp.maximum(py1, ty1), 0.0)
        inter = iw * ih
        den = p_area + t_area - inter
        den = jnp.where(den > 0.0, den, 1.0)   # zero-area / padded cells
        return inter / den

    iou0 = iou(p[0:5, :])
    iou1 = iou(p[5:10, :])
    resp1 = iou1 > iou0                        # (1, rows); tie -> box 0 (as ref)
    max_iou = jnp.maximum(iou0, iou1)

    # Slab-wise responsible-box selection (2 selects instead of 9).
    pr = jnp.where(resp1, p[5:10, :], p[0:5, :])   # (5, rows)
    tr = jnp.where(resp1, t[5:10, :], t[0:5, :])

    dxy = (pr[0:2, :] - tr[0:2, :]) ** 2
    loss_xy = dxy[0:1, :] + dxy[1:2, :]
    # NOTE: sqrt of a negative predicted w/h yields NaN, exactly as in the
    # PyTorch reference (no extra clamping added, to preserve semantics).
    dwh = (jnp.sqrt(pr[2:4, :]) - jnp.sqrt(tr[2:4, :])) ** 2
    loss_wh = dwh[0:1, :] + dwh[1:2, :]
    loss_obj = (pr[4:5, :] - max_iou) ** 2

    coord = LAMBDA_COORD * (loss_xy + loss_wh) + loss_obj + cls_sq
    per_cell = (jnp.where(has_obj, coord, 0.0)
                + LAMBDA_NOOBJ * jnp.where(no_obj, noobj_sq, 0.0))  # (1, rows)

    # Mask lanes beyond the end of the array (partial last tile and any
    # clamped duplicate step of the parallel split contribute exactly zero).
    base = (c * tiles_per_split + i) * rows
    lane = jax.lax.broadcasted_iota(jnp.int32, (1, rows), 1)
    valid = (base + lane) < total_cells

    out_ref[...] += jnp.where(valid, per_cell, 0.0)[None, :, :]


def yolo_v1_loss(prediction, target):
    """prediction/target: (batch, S, S, 5*B + C). Returns scalar f32 loss."""
    batch = prediction.shape[0]
    M = batch * FS * FS

    # Row tile: multiple of 8, never larger than the array, capped by VMEM.
    R = min(R_MAX, (M // 8) * 8)
    num_tiles = -(-M // R)
    # Leading "parallel" axis: shards tiles across the 2 TensorCores on v7x.
    # Tile size no longer depends on it, so on 1-TC chips (v5e/v6e) its only
    # cost is at most one fully-masked duplicate grid step.
    nsplit = 2 if num_tiles >= 2 else 1
    tps = -(-num_tiles // nsplit)

    # Free row-major views — no host-side pad / transpose / extra HBM passes.
    pred2 = prediction.reshape(M, NFEAT)
    targ2 = target.reshape(M, NFEAT)

    if nsplit * tps == num_tiles:
        def in_map(c, i):
            return (c * tps + i, 0)
    else:
        # Odd tile count: clamp the overhanging step onto the last real tile;
        # its contribution is zeroed by the in-kernel validity mask.
        def in_map(c, i):
            return (jnp.minimum(c * tps + i, num_tiles - 1), 0)

    kernel = functools.partial(_loss_kernel, rows=R, total_cells=M,
                               tiles_per_split=tps)

    partial_sums = pl.pallas_call(
        kernel,
        out_shape=jax.ShapeDtypeStruct((nsplit, 1, R), jnp.float32),
        grid_spec=pl.GridSpec(
            grid=(nsplit, tps),
            in_specs=[pl.BlockSpec((R, NFEAT), in_map),
                      pl.BlockSpec((R, NFEAT), in_map)],
            out_specs=pl.BlockSpec((1, 1, R), lambda c, i: (c, 0, 0)),
        ),
        compiler_params=pltpu.CompilerParams(
            dimension_semantics=("parallel", "arbitrary")),
    )(pred2, targ2)

    return jnp.sum(partial_sums) / float(batch)


def _reference_loss(prediction, target):
    """Pure-JAX reference mirroring the PyTorch semantics (same masked math)."""
    p = prediction.reshape(-1, NFEAT).astype(jnp.float32)
    t = target.reshape(-1, NFEAT).astype(jnp.float32)
    S = float(FS)
    batch = prediction.shape[0]
    has_obj = t[:, 4:5] > 0.0
    no_obj = t[:, 4:5] == 0.0
    noobj = jnp.where(no_obj,
                      (p[:, 4:5] - t[:, 4:5]) ** 2 + (p[:, 9:10] - t[:, 9:10]) ** 2, 0.0)
    cls = jnp.where(has_obj,
                    jnp.sum((p[:, 10:] - t[:, 10:]) ** 2, axis=1, keepdims=True), 0.0)

    def xyxy(b):
        cx, cy, hw, hh = b[:, 0:1] / S, b[:, 1:2] / S, 0.5 * b[:, 2:3], 0.5 * b[:, 3:4]
        return cx - hw, cy - hh, cx + hw, cy + hh

    tx1, ty1, tx2, ty2 = xyxy(t[:, 0:5])
    ta = (tx2 - tx1) * (ty2 - ty1)

    def iou(b):
        x1, y1, x2, y2 = xyxy(b)
        pa = (x2 - x1) * (y2 - y1)
        iw = jnp.maximum(jnp.minimum(x2, tx2) - jnp.maximum(x1, tx1), 0.0)
        ih = jnp.maximum(jnp.minimum(y2, ty2) - jnp.maximum(y1, ty1), 0.0)
        inter = iw * ih
        return inter / (pa + ta - inter)

    i0, i1 = iou(p[:, 0:5]), iou(p[:, 5:10])
    r1 = i1 > i0
    mi = jnp.maximum(i0, i1)
    pr = jnp.where(r1, p[:, 5:10], p[:, 0:5])
    tr = jnp.where(r1, t[:, 5:10], t[:, 0:5])
    xy = jnp.sum((pr[:, 0:2] - tr[:, 0:2]) ** 2, axis=1, keepdims=True)
    wh = jnp.sum((jnp.sqrt(pr[:, 2:4]) - jnp.sqrt(tr[:, 2:4])) ** 2, axis=1, keepdims=True)
    ob = (pr[:, 4:5] - mi) ** 2
    coord = jnp.where(has_obj, LAMBDA_COORD * (xy + wh) + ob, 0.0)
    return jnp.sum(coord + cls + LAMBDA_NOOBJ * noobj) / float(batch)


if __name__ == "__main__":
    key = jax.random.PRNGKey(0)
    kp, kb, km, kc = jax.random.split(key, 4)
    batch = 2

    # Predictions in (0,1) so sqrt(w), sqrt(h) are well defined (as in YOLO).
    prediction = jax.random.uniform(kp, (batch, FS, FS, NFEAT), jnp.float32,
                                    minval=0.05, maxval=0.95)

    # YOLO-style target: ~30% of cells contain an object; both boxes share the
    # same ground-truth (x,y,w,h,conf=1); one-hot class; zeros elsewhere.
    obj_mask = (jax.random.uniform(km, (batch, FS, FS)) > 0.7).astype(jnp.float32)
    boxes = jax.random.uniform(kb, (batch, FS, FS, 4), jnp.float32,
                               minval=0.1, maxval=0.9)
    box5 = jnp.concatenate([boxes, jnp.ones((batch, FS, FS, 1), jnp.float32)], axis=-1)
    cls_idx = jax.random.randint(kc, (batch, FS, FS), 0, NC)
    one_hot = jax.nn.one_hot(cls_idx, NC, dtype=jnp.float32)
    target = jnp.concatenate([box5, box5, one_hot], axis=-1) * obj_mask[..., None]

    loss = yolo_v1_loss(prediction, target)
    loss = jax.block_until_ready(loss)

    ref = jax.block_until_ready(_reference_loss(prediction, target))
    assert jnp.isfinite(loss), "loss is not finite"
    assert jnp.allclose(loss, ref, rtol=1e-3, atol=1e-4), (loss, ref)

    print("KERNEL_OK")
</pallas_src>

<mosaic_0001>
module attributes {stable_mosaic.version = 11 : i64} {
  func.func @_loss_kernel(%arg0: i32, %arg1: i32, %arg2: memref<96x30xf32, #tpu.memory_space<vmem>>, %arg3: memref<96x30xf32, #tpu.memory_space<vmem>>, %arg4: memref<1x1x96xf32, #tpu.memory_space<vmem>>) attributes {dimension_semantics = [#tpu.dimension_semantics<parallel>, #tpu.dimension_semantics<arbitrary>], iteration_bounds = array<i64: 2, 1>, scalar_prefetch = 0 : i64, scratch_operands = 0 : i64, tpu.core_type = #tpu.core_type<tc>, window_params = [{transform_indices = @transform_0, window_bounds = array<i64: 96, 30>}, {transform_indices = @transform_1, window_bounds = array<i64: 96, 30>}, {transform_indices = @transform_2, window_bounds = array<i64: 1, 1, 96>}]} {
    %c0_i32 = arith.constant 0 : i32
    %0 = arith.cmpi eq, %arg1, %c0_i32 : i32
    %1 = arith.extui %0 : i1 to i32
    %c0_i32_0 = arith.constant 0 : i32
    %2 = arith.cmpi ne, %1, %c0_i32_0 : i32
    scf.if %2 {
      %cst_37 = arith.constant 0.000000e+00 : f32
      %173 = vector.broadcast %cst_37 : f32 to vector<1x1x96xf32>
      %c0_38 = arith.constant 0 : index
      %c0_39 = arith.constant 0 : index
      %c0_40 = arith.constant 0 : index
      %174 = vector.load %arg4[%c0_38, %c0_39, %c0_40] : memref<1x1x96xf32, #tpu.memory_space<vmem>>, vector<1x1x96xf32>
      tpu.vector_store %arg4[%c0_38, %c0_39, %c0_40], %173 {strides = array<i32>} : memref<1x1x96xf32, #tpu.memory_space<vmem>>, vector<1x1x96xf32>,
    } else {
    }
    %c0 = arith.constant 0 : index
    %c0_1 = arith.constant 0 : index
    %3 = vector.load %arg2[%c0, %c0_1] : memref<96x30xf32, #tpu.memory_space<vmem>>, vector<96x30xf32>
    %4 = tpu.transpose %3, [1, 0] : vector<96x30xf32> -> vector<30x96xf32>
    %c0_2 = arith.constant 0 : index
    %c0_3 = arith.constant 0 : index
    %5 = vector.load %arg3[%c0_2, %c0_3] : memref<96x30xf32, #tpu.memory_space<vmem>>, vector<96x30xf32>
    %6 = tpu.transpose %5, [1, 0] : vector<96x30xf32> -> vector<30x96xf32>
    %7 = vector.extract_strided_slice %6 {offsets = [4, 0], sizes = [1, 96], strides = [1, 1]} : vector<30x96xf32> to vector<1x96xf32>
    %cst = arith.constant 0.000000e+00 : f32
    %8 = vector.broadcast %cst : f32 to vector<1x96xf32>
    %9 = arith.cmpf ogt, %7, %8 : vector<1x96xf32>
    %cst_4 = arith.constant 0.000000e+00 : f32
    %10 = vector.broadcast %cst_4 : f32 to vector<1x96xf32>
    %11 = arith.cmpf oeq, %7, %10 : vector<1x96xf32>
    %12 = arith.subf %4, %6 : vector<30x96xf32>
    %13 = arith.mulf %12, %12 : vector<30x96xf32>
    %14 = vector.extract_strided_slice %13 {offsets = [4, 0], sizes = [1, 96], strides = [1, 1]} : vector<30x96xf32> to vector<1x96xf32>
    %15 = vector.extract_strided_slice %13 {offsets = [9, 0], sizes = [1, 96], strides = [1, 1]} : vector<30x96xf32> to vector<1x96xf32>
    %16 = arith.addf %14, %15 : vector<1x96xf32>
    %17 = vector.extract_strided_slice %13 {offsets = [10, 0], sizes = [20, 96], strides = [1, 1]} : vector<30x96xf32> to vector<20x96xf32>
    %cst_5 = arith.constant dense<0.000000e+00> : vector<96xf32>
    %18 = vector.multi_reduction <add>, %17, %cst_5 [0] : vector<20x96xf32> to vector<96xf32>
    %19 = vector.shape_cast %18 : vector<96xf32> to vector<1x96xf32>
    %20 = vector.extract_strided_slice %6 {offsets = [0, 0], sizes = [5, 96], strides = [1, 1]} : vector<30x96xf32> to vector<5x96xf32>
    %21 = vector.extract_strided_slice %20 {offsets = [0, 0], sizes = [1, 96], strides = [1, 1]} : vector<5x96xf32> to vector<1x96xf32>
    %cst_6 = arith.constant 0.142857149 : f32
    %22 = vector.broadcast %cst_6 : f32 to vector<1x96xf32>
    %23 = arith.mulf %21, %22 : vector<1x96xf32>
    %24 = vector.extract_strided_slice %20 {offsets = [1, 0], sizes = [1, 96], strides = [1, 1]} : vector<5x96xf32> to vector<1x96xf32>
    %cst_7 = arith.constant 0.142857149 : f32
    %25 = vector.broadcast %cst_7 : f32 to vector<1x96xf32>
    %26 = arith.mulf %24, %25 : vector<1x96xf32>
    %27 = vector.extract_strided_slice %20 {offsets = [2, 0], sizes = [1, 96], strides = [1, 1]} : vector<5x96xf32> to vector<1x96xf32>
    %cst_8 = arith.constant 5.000000e-01 : f32
    %28 = vector.broadcast %cst_8 : f32 to vector<1x96xf32>
    %29 = arith.mulf %28, %27 : vector<1x96xf32>
    %30 = vector.extract_strided_slice %20 {offsets = [3, 0], sizes = [1, 96], strides = [1, 1]} : vector<5x96xf32> to vector<1x96xf32>
    %cst_9 = arith.constant 5.000000e-01 : f32
    %31 = vector.broadcast %cst_9 : f32 to vector<1x96xf32>
    %32 = arith.mulf %31, %30 : vector<1x96xf32>
    %33 = arith.subf %23, %29 : vector<1x96xf32>
    %34 = arith.subf %26, %32 : vector<1x96xf32>
    %35 = arith.addf %23, %29 : vector<1x96xf32>
    %36 = arith.addf %26, %32 : vector<1x96xf32>
    %37 = arith.subf %35, %33 : vector<1x96xf32>
    %38 = arith.subf %36, %34 : vector<1x96xf32>
    %39 = arith.mulf %37, %38 : vector<1x96xf32>
    %40 = vector.extract_strided_slice %4 {offsets = [0, 0], sizes = [5, 96], strides = [1, 1]} : vector<30x96xf32> to vector<5x96xf32>
    %41 = vector.extract_strided_slice %40 {offsets = [0, 0], sizes = [1, 96], strides = [1, 1]} : vector<5x96xf32> to vector<1x96xf32>
    %cst_10 = arith.constant 0.142857149 : f32
    %42 = vector.broadcast %cst_10 : f32 to vector<1x96xf32>
    %43 = arith.mulf %41, %42 : vector<1x96xf32>
    %44 = vector.extract_strided_slice %40 {offsets = [1, 0], sizes = [1, 96], strides = [1, 1]} : vector<5x96xf32> to vector<1x96xf32>
    %cst_11 = arith.constant 0.142857149 : f32
    %45 = vector.broadcast %cst_11 : f32 to vector<1x96xf32>
    %46 = arith.mulf %44, %45 : vector<1x96xf32>
    %47 = vector.extract_strided_slice %40 {offsets = [2, 0], sizes = [1, 96], strides = [1, 1]} : vector<5x96xf32> to vector<1x96xf32>
    %cst_12 = arith.constant 5.000000e-01 : f32
    %48 = vector.broadcast %cst_12 : f32 to vector<1x96xf32>
    %49 = arith.mulf %48, %47 : vector<1x96xf32>
    %50 = vector.extract_strided_slice %40 {offsets = [3, 0], sizes = [1, 96], strides = [1, 1]} : vector<5x96xf32> to vector<1x96xf32>
    %cst_13 = arith.constant 5.000000e-01 : f32
    %51 = vector.broadcast %cst_13 : f32 to vector<1x96xf32>
    %52 = arith.mulf %51, %50 : vector<1x96xf32>
    %53 = arith.subf %43, %49 : vector<1x96xf32>
    %54 = arith.subf %46, %52 : vector<1x96xf32>
    %55 = arith.addf %43, %49 : vector<1x96xf32>
    %56 = arith.addf %46, %52 : vector<1x96xf32>
    %57 = arith.subf %55, %53 : vector<1x96xf32>
    %58 = arith.subf %56, %54 : vector<1x96xf32>
    %59 = arith.mulf %57, %58 : vector<1x96xf32>
    %60 = arith.minimumf %55, %35 : vector<1x96xf32>
    %61 = arith.maximumf %53, %33 : vector<1x96xf32>
    %62 = arith.subf %60, %61 : vector<1x96xf32>
    %cst_14 = arith.constant 0.000000e+00 : f32
    %63 = vector.broadcast %cst_14 : f32 to vector<1x96xf32>
    %64 = arith.maximumf %62, %63 : vector<1x96xf32>
    %65 = arith.minimumf %56, %36 : vector<1x96xf32>
    %66 = arith.maximumf %54, %34 : vector<1x96xf32>
    %67 = arith.subf %65, %66 : vector<1x96xf32>
    %cst_15 = arith.constant 0.000000e+00 : f32
    %68 = vector.broadcast %cst_15 : f32 to vector<1x96xf32>
    %69 = arith.maximumf %67, %68 : vector<1x96xf32>
    %70 = arith.mulf %64, %69 : vector<1x96xf32>
    %71 = arith.addf %59, %39 : vector<1x96xf32>
    %72 = arith.subf %71, %70 : vector<1x96xf32>
    %cst_16 = arith.constant 0.000000e+00 : f32
    %73 = vector.broadcast %cst_16 : f32 to vector<1x96xf32>
    %74 = arith.cmpf ogt, %72, %73 : vector<1x96xf32>
    %cst_17 = arith.constant 1.000000e+00 : f32
    %75 = vector.broadcast %cst_17 : f32 to vector<1x96xf32>
    %76 = arith.select %74, %72, %75 : vector<1x96xi1>, vector<1x96xf32>
    %77 = arith.divf %70, %76 : vector<1x96xf32>
    %78 = vector.extract_strided_slice %4 {offsets = [5, 0], sizes = [5, 96], strides = [1, 1]} : vector<30x96xf32> to vector<5x96xf32>
    %79 = vector.extract_strided_slice %78 {offsets = [0, 0], sizes = [1, 96], strides = [1, 1]} : vector<5x96xf32> to vector<1x96xf32>
    %cst_18 = arith.constant 0.142857149 : f32
    %80 = vector.broadcast %cst_18 : f32 to vector<1x96xf32>
    %81 = arith.mulf %79, %80 : vector<1x96xf32>
    %82 = vector.extract_strided_slice %78 {offsets = [1, 0], sizes = [1, 96], strides = [1, 1]} : vector<5x96xf32> to vector<1x96xf32>
    %cst_19 = arith.constant 0.142857149 : f32
    %83 = vector.broadcast %cst_19 : f32 to vector<1x96xf32>
    %84 = arith.mulf %82, %83 : vector<1x96xf32>
    %85 = vector.extract_strided_slice %78 {offsets = [2, 0], sizes = [1, 96], strides = [1, 1]} : vector<5x96xf32> to vector<1x96xf32>
    %cst_20 = arith.constant 5.000000e-01 : f32
    %86 = vector.broadcast %cst_20 : f32 to vector<1x96xf32>
    %87 = arith.mulf %86, %85 : vector<1x96xf32>
    %88 = vector.extract_strided_slice %78 {offsets = [3, 0], sizes = [1, 96], strides = [1, 1]} : vector<5x96xf32> to vector<1x96xf32>
    %cst_21 = arith.constant 5.000000e-01 : f32
    %89 = vector.broadcast %cst_21 : f32 to vector<1x96xf32>
    %90 = arith.mulf %89, %88 : vector<1x96xf32>
    %91 = arith.subf %81, %87 : vector<1x96xf32>
    %92 = arith.subf %84, %90 : vector<1x96xf32>
    %93 = arith.addf %81, %87 : vector<1x96xf32>
    %94 = arith.addf %84, %90 : vector<1x96xf32>
    %95 = arith.subf %93, %91 : vector<1x96xf32>
    %96 = arith.subf %94, %92 : vector<1x96xf32>
    %97 = arith.mulf %95, %96 : vector<1x96xf32>
    %98 = arith.minimumf %93, %35 : vector<1x96xf32>
    %99 = arith.maximumf %91, %33 : vector<1x96xf32>
    %100 = arith.subf %98, %99 : vector<1x96xf32>
    %cst_22 = arith.constant 0.000000e+00 : f32
    %101 = vector.broadcast %cst_22 : f32 to vector<1x96xf32>
    %102 = arith.maximumf %100, %101 : vector<1x96xf32>
    %103 = arith.minimumf %94, %36 : vector<1x96xf32>
    %104 = arith.maximumf %92, %34 : vector<1x96xf32>
    %105 = arith.subf %103, %104 : vector<1x96xf32>
    %cst_23 = arith.constant 0.000000e+00 : f32
    %106 = vector.broadcast %cst_23 : f32 to vector<1x96xf32>
    %107 = arith.maximumf %105, %106 : vector<1x96xf32>
    %108 = arith.mulf %102, %107 : vector<1x96xf32>
    %109 = arith.addf %97, %39 : vector<1x96xf32>
    %110 = arith.subf %109, %108 : vector<1x96xf32>
    %cst_24 = arith.constant 0.000000e+00 : f32
    %111 = vector.broadcast %cst_24 : f32 to vector<1x96xf32>
    %112 = arith.cmpf ogt, %110, %111 : vector<1x96xf32>
    %cst_25 = arith.constant 1.000000e+00 : f32
    %113 = vector.broadcast %cst_25 : f32 to vector<1x96xf32>
    %114 = arith.select %112, %110, %113 : vector<1x96xi1>, vector<1x96xf32>
    %115 = arith.divf %108, %114 : vector<1x96xf32>
    %116 = arith.cmpf ogt, %115, %77 : vector<1x96xf32>
    %117 = arith.maximumf %77, %115 : vector<1x96xf32>
    %118 = vector.extract_strided_slice %4 {offsets = [5, 0], sizes = [5, 96], strides = [1, 1]} : vector<30x96xf32> to vector<5x96xf32>
    %119 = vector.extract_strided_slice %4 {offsets = [0, 0], sizes = [5, 96], strides = [1, 1]} : vector<30x96xf32> to vector<5x96xf32>
    %120 = vector.shape_cast %116 : vector<1x96xi1> to vector<1x96xi1>
    %121 = vector.broadcast %120 : vector<1x96xi1> to vector<5x96xi1>
    %122 = arith.select %121, %118, %119 : vector<5x96xi1>, vector<5x96xf32>
    %123 = vector.extract_strided_slice %6 {offsets = [5, 0], sizes = [5, 96], strides = [1, 1]} : vector<30x96xf32> to vector<5x96xf32>
    %124 = vector.extract_strided_slice %6 {offsets = [0, 0], sizes = [5, 96], strides = [1, 1]} : vector<30x96xf32> to vector<5x96xf32>
    %125 = vector.shape_cast %116 : vector<1x96xi1> to vector<1x96xi1>
    %126 = vector.broadcast %125 : vector<1x96xi1> to vector<5x96xi1>
    %127 = arith.select %126, %123, %124 : vector<5x96xi1>, vector<5x96xf32>
    %128 = vector.extract_strided_slice %122 {offsets = [0, 0], sizes = [2, 96], strides = [1, 1]} : vector<5x96xf32> to vector<2x96xf32>
    %129 = vector.extract_strided_slice %127 {offsets = [0, 0], sizes = [2, 96], strides = [1, 1]} : vector<5x96xf32> to vector<2x96xf32>
    %130 = arith.subf %128, %129 : vector<2x96xf32>
    %131 = arith.mulf %130, %130 : vector<2x96xf32>
    %132 = vector.extract_strided_slice %131 {offsets = [0, 0], sizes = [1, 96], strides = [1, 1]} : vector<2x96xf32> to vector<1x96xf32>
    %133 = vector.extract_strided_slice %131 {offsets = [1, 0], sizes = [1, 96], strides = [1, 1]} : vector<2x96xf32> to vector<1x96xf32>
    %134 = arith.addf %132, %133 : vector<1x96xf32>
    %135 = vector.extract_strided_slice %122 {offsets = [2, 0], sizes = [2, 96], strides = [1, 1]} : vector<5x96xf32> to vector<2x96xf32>
    %136 = math.sqrt %135 : vector<2x96xf32>
    %137 = vector.extract_strided_slice %127 {offsets = [2, 0], sizes = [2, 96], strides = [1, 1]} : vector<5x96xf32> to vector<2x96xf32>
    %138 = math.sqrt %137 : vector<2x96xf32>
    %139 = arith.subf %136, %138 : vector<2x96xf32>
    %140 = arith.mulf %139, %139 : vector<2x96xf32>
    %141 = vector.extract_strided_slice %140 {offsets = [0, 0], sizes = [1, 96], strides = [1, 1]} : vector<2x96xf32> to vector<1x96xf32>
    %142 = vector.extract_strided_slice %140 {offsets = [1, 0], sizes = [1, 96], strides = [1, 1]} : vector<2x96xf32> to vector<1x96xf32>
    %143 = arith.addf %141, %142 : vector<1x96xf32>
    %144 = vector.extract_strided_slice %122 {offsets = [4, 0], sizes = [1, 96], strides = [1, 1]} : vector<5x96xf32> to vector<1x96xf32>
    %145 = arith.subf %144, %117 : vector<1x96xf32>
    %146 = arith.mulf %145, %145 : vector<1x96xf32>
    %147 = arith.addf %134, %143 : vector<1x96xf32>
    %cst_26 = arith.constant 5.000000e+00 : f32
    %148 = vector.broadcast %cst_26 : f32 to vector<1x96xf32>
    %149 = arith.mulf %148, %147 : vector<1x96xf32>
    %150 = arith.addf %149, %146 : vector<1x96xf32>
    %151 = arith.addf %150, %19 : vector<1x96xf32>
    %cst_27 = arith.constant 0.000000e+00 : f32
    %152 = vector.broadcast %cst_27 : f32 to vector<1x96xf32>
    %153 = arith.select %9, %151, %152 : vector<1x96xi1>, vector<1x96xf32>
    %cst_28 = arith.constant 0.000000e+00 : f32
    %154 = vector.broadcast %cst_28 : f32 to vector<1x96xf32>
    %155 = arith.select %11, %16, %154 : vector<1x96xi1>, vector<1x96xf32>
    %cst_29 = arith.constant 5.000000e-01 : f32
    %156 = vector.broadcast %cst_29 : f32 to vector<1x96xf32>
    %157 = arith.mulf %156, %155 : vector<1x96xf32>
    %158 = arith.addf %153, %157 : vector<1x96xf32>
    %c1_i32 = arith.constant 1 : i32
    %159 = arith.muli %arg0, %c1_i32 : i32
    %160 = arith.addi %159, %arg1 : i32
    %c96_i32 = arith.constant 96 : i32
    %161 = arith.muli %160, %c96_i32 : i32
    %162 = tpu.iota {dimensions = array<i32: 1>} : vector<1x96xi32>
    %163 = vector.broadcast %161 : i32 to vector<1x96xi32>
    %164 = arith.addi %163, %162 : vector<1x96xi32>
    %c98_i32 = arith.constant 98 : i32
    %165 = vector.broadcast %c98_i32 : i32 to vector<1x96xi32>
    %166 = arith.cmpi slt, %164, %165 : vector<1x96xi32>
    %c0_30 = arith.constant 0 : index
    %c0_31 = arith.constant 0 : index
    %c0_32 = arith.constant 0 : index
    %167 = vector.load %arg4[%c0_30, %c0_31, %c0_32] : memref<1x1x96xf32, #tpu.memory_space<vmem>>, vector<1x1x96xf32>
    %cst_33 = arith.constant 0.000000e+00 : f32
    %168 = vector.broadcast %cst_33 : f32 to vector<1x96xf32>
    %169 = arith.select %166, %158, %168 : vector<1x96xi1>, vector<1x96xf32>
    %170 = vector.shape_cast %169 : vector<1x96xf32> to vector<1x1x96xf32>
    %171 = arith.addf %167, %170 : vector<1x1x96xf32>
    %c0_34 = arith.constant 0 : index
    %c0_35 = arith.constant 0 : index
    %c0_36 = arith.constant 0 : index
    %172 = vector.load %arg4[%c0_34, %c0_35, %c0_36] : memref<1x1x96xf32, #tpu.memory_space<vmem>>, vector<1x1x96xf32>
    tpu.vector_store %arg4[%c0_34, %c0_35, %c0_36], %171 {strides = array<i32>} : memref<1x1x96xf32, #tpu.memory_space<vmem>>, vector<1x1x96xf32>,
    return
  }
  func.func @transform_0(%arg0: i32, %arg1: i32) -> (i32, i32) {
    %c1_i32 = arith.constant 1 : i32
    %0 = arith.muli %arg0, %c1_i32 : i32
    %1 = arith.addi %0, %arg1 : i32
    %c0_i32 = arith.constant 0 : i32
    %c0_i32_0 = arith.constant 0 : i32
    return %1, %c0_i32 : i32, i32
  }
  func.func @transform_1(%arg0: i32, %arg1: i32) -> (i32, i32) {
    %c1_i32 = arith.constant 1 : i32
    %0 = arith.muli %arg0, %c1_i32 : i32
    %1 = arith.addi %0, %arg1 : i32
    %c0_i32 = arith.constant 0 : i32
    %c0_i32_0 = arith.constant 0 : i32
    return %1, %c0_i32 : i32, i32
  }
  func.func @transform_2(%arg0: i32, %arg1: i32) -> (i32, i32, i32) {
    %c0_i32 = arith.constant 0 : i32
    %c0_i32_0 = arith.constant 0 : i32
    %c0_i32_1 = arith.constant 0 : i32
    return %arg0, %c0_i32, %c0_i32_0 : i32, i32, i32
  }
}

</mosaic_0001>

<bundles_post_ra>
// kernel: tpu_custom_call.1
= control target key start
LH: loop header
LB: loop body
LE: loop exit
PB: predicated region body
PF: predicated region fallthrough
CT: control target
= control target key end

     0   :  { %7 = vsyncpa [#allocation3], 0  ;;  %s1067_s0 = inlined_call_operand.vmem [shape: f32[98,30], index: 0, kind: input, shape index: {}]   ;;  %s1068_s1 = inlined_call_operand.vmem [shape: f32[98,30], index: 1, kind: input, shape index: {}]   ;;  %s1069_s2 = inlined_call_operand.hbm [shape: f32[2,1,96], index: 2, kind: output, shape index: {}]  }
   0x1   :  { %9 = vsyncpa [#allocation3 + $0x1], 0  ;;  %s850_s9 = smov 0   ;;  %s852_s10 = smov 0  }
   0x2   :  { %s854_s11 = smov 0   ;;  %s856_s12 = smov 0  }
   0x3   :  { %s858_s13 = smov 0   ;;  %s860_s14 = smov 0  }
   0x4 LB: > { %s675_s15 = sadd.s32 4294967295, %s831_s14   ;;  %s676_s16 = sadd.s32 4294967294, %s831_s14   ;;  %s831_s14 = sphi %s860_s14, %s15_s14   ;;  %s827_s13 = sphi %s858_s13, %s1076_s13   ;;  %s823_s12 = sphi %s856_s12, %s1075_s12   ;;  %s819_s11 = sphi %s854_s11, %s1074_s11   ;;  %s815_s10 = sphi %s852_s10, %s1073_s10   ;;  %s811_s9 = sphi %s850_s9, %s1072_s9  }
   0x5   : > { %s27_s17 = sadd.s32 1, %s827_s13  ;;  %s90_s18 = sadd.s32 1, %s819_s11 }
   0x6   : > { %p29_p0 = scmp.ge.s32.totalorder %s27_s17, 2  ;;  %p100_p1 = scmp.ne.s32.totalorder %s819_s11, %s815_s10 }
   0x7   : > { %p101_p2 = scmp.eq.s32.totalorder %s675_s15, 1  ;;  %p106_p3 = scmp.ne.s32.totalorder %s815_s10, %s811_s9 }
   0x8   : > { %s1078_s17 = smov (%p29_p0, %s27_s17), 0  ;;  %p107_p5 = scmp.eq.s32.totalorder %s676_s16, 1 }
   0x9   : > { %p890_p4 = por %p101_p2, %p100_p1  ;;  %s87_s20 = ssub.s32 %s827_s13, %s1078_s17 }
   0xa   : > { %p679_p6 = scmp.ge.s32.totalorder %s831_s14, 1  ;;  %p88_p7 = scmp.eq.s32.totalorder %s87_s20, 0 }
   0xb   : > { %p897_p8 = por %p107_p5, %p106_p3  ;;  %p163_p9 = scmp.lt.s32.totalorder %s831_s14, 3 }
   0xc   : > { %s903_s22 = scalar_select %p88_p7, %s819_s11, %s90_s18  }
   0xd   : > { %p164_p10 = pnand %p679_p6, %p163_p9 }
   0xe   : > { %s200_s23 = smul.u32 (!%p164_p10), 12, %s823_s12  ;;  %s197_s3 = sand.u32 (!%p164_p10), 1, %s815_s10  }
   0xf   : > { %167 = sbr.rel (%p164_p10) target bundleno = 305 (0x131), region = 28  ;;  %s995_s4 = scalar_lea.vmem (!%p164_p10), [#allocation2], %s197_s3 }
  0x10   : > { %p205_p11 = scmp.lt.s32.totalorder (!%p164_p10), %s200_s23, 12  ;;  %s571_s5 = smul.u32 (!%p164_p10), 96, %s823_s12 }
  0x11   : > { %s596_s8 = scalar_lea.hbm (!%p164_p10), %s1069_s2, %s823_s12  ;;  %s598_s15 = sshll.u32 (!%p164_p10), %s995_s4, 4  ;;  %s599_s15 = int_to_ptr.vmem [resolvable:$true] %s598_s15 }
  0x12   : > { %s600_s16 = sshll.u32 (!%p164_p10), %s596_s8, 4  ;;  %s588_s18 = scalar_lea.sflag (!%p164_p10), [#allocation3], %s197_s3  ;;  %s601_s16 = int_to_ptr.hbm [resolvable:$true] %s600_s16 }
  0x13   : > { %s767_s20 = sshra.s32 (!%p164_p10), %s601_s16, 4  ;;  %s773_s25 = scalar_lea.hbm (!%p164_p10), %s1069_s2, 2  ;;  %s768_s20 = int_to_ptr.hbm [resolvable:$true] %s767_s20 }
  0x14   : > { %s1080_s23 = smov (!%p205_p11, %s200_s23), 12  ;;  %vm341_vm13 = vcmask 1045504   ;;  %vm350_vm14 = vcmask 785408   ;;  %vm354_vm15 = vcmask 781312   ;;  %p774_p1 = scmp.lt.s32.totalorder %s768_s20, %s1069_s2 }
  0x15   : > { %s680_s24 = sshll.u32 %s1080_s23, 3  ;;  %s769_s23 = scalar_lea.hbm %s768_s20, 1 }
  0x16   : > { %s909_s27 = scalar_lea.vmem %s1068_s1, %s680_s24  ;;  %s914_s30 = scalar_lea.vmem %s1067_s0, %s680_s24 }
  0x17   : > { %v281_v0 = vld [vmem:[%s909_s27] sm:$0xff]  ;;  %v282_v2 = vld [vmem:[%s909_s27 + $0x8] sm:$0xff]  ;;  %v283_v4 = vld [vmem:[%s909_s27 + $0x10] sm:$0xff]  ;;  %p770_p12 = scmp.ne.s32.totalorder %s768_s20, %s769_s23  ;;  %p775_p2 = scmp.lt.s32.totalorder %s773_s25, %s769_s23 }
  0x18   : > { %v237_v1 = vld [vmem:[%s914_s30] sm:$0xff]  ;;  %293 = vxpose.xlu1.b32.start [1/12] (short) (narrow) %v281_v0, 32  ;;  %v238_v3 = vld [vmem:[%s914_s30 + $0x8] sm:$0xff]  ;;  %v239_v5 = vld [vmem:[%s914_s30 + $0x10] sm:$0xff] }
  0x19   : > { %249 = vxpose.xlu0.b32.start [1/12] (short) (narrow) %v237_v1, 32  ;;  %v284_v6 = vld [vmem:[%s909_s27 + $0x18] sm:$0xff]  ;;  %v285_v8 = vld [vmem:[%s909_s27 + $0x20] sm:$0xff]  ;;  %v286_v10 = vld [vmem:[%s909_s27 + $0x28] sm:$0xff]  ;;  %p771_p13 = pnand %p770_p12, %p890_p4  ;;  %p776_p3 = por %p775_p2, %p774_p1 }
  0x1a   : > { %v240_v7 = vld [vmem:[%s914_s30 + $0x18] sm:$0xff]  ;;  %v241_v9 = vld [vmem:[%s914_s30 + $0x20] sm:$0xff]  ;;  %v242_v11 = vld [vmem:[%s914_s30 + $0x28] sm:$0xff] }
  0x1b   : > { %v287_v12 = vld [vmem:[%s909_s27 + $0x30] sm:$0xff]  ;;  %v288_v14 = vld [vmem:[%s909_s27 + $0x38] sm:$0xff]  ;;  %v289_v16 = vld [vmem:[%s909_s27 + $0x40] sm:$0xff]  ;;  %p772_p0 = pneg %p771_p13 }
  0x1c   : > { %v243_v13 = vld [vmem:[%s914_s30 + $0x30] sm:$0xff]  ;;  %v244_v15 = vld [vmem:[%s914_s30 + $0x38] sm:$0xff]  ;;  %v245_v17 = vld [vmem:[%s914_s30 + $0x40] sm:$0xff] }
  0x1d   : > { %v290_v18 = vld [vmem:[%s909_s27 + $0x48] sm:$0xff]  ;;  %v291_v20 = vld [vmem:[%s909_s27 + $0x50] sm:$0xff]  ;;  %v292_v22 = vld [vmem:[%s909_s27 + $0x58] sm:$0xff]  ;;  %p777_p5 = pnand %p776_p3, %p772_p0 }
  0x1e   : > { %v246_v19 = vld [vmem:[%s914_s30 + $0x48] sm:$0xff]  ;;  %v247_v21 = vld [vmem:[%s914_s30 + $0x50] sm:$0xff]  ;;  %v248_v23 = vld [vmem:[%s914_s30 + $0x58] sm:$0xff] }
  0x20   : > { %294 = vxpose.xlu1.b32.cont [2/12] (short) (narrow) %v282_v2, 32 }
  0x21   : > { %250 = vxpose.xlu0.b32.cont [2/12] (short) (narrow) %v238_v3, 32 }
  0x28   : > { %295 = vxpose.xlu1.b32.cont [3/12] (short) (narrow) %v283_v4, 32 }
  0x29   : > { %251 = vxpose.xlu0.b32.cont [3/12] (short) (narrow) %v239_v5, 32 }
  0x30   : > { %296 = vxpose.xlu1.b32.cont [4/12] (short) (narrow) %v284_v6, 32 }
  0x31   : > { %252 = vxpose.xlu0.b32.cont [4/12] (short) (narrow) %v240_v7, 32 }
  0x38   : > { %297 = vxpose.xlu1.b32.cont [5/12] (short) (narrow) %v285_v8, 32 }
  0x39   : > { %253 = vxpose.xlu0.b32.cont [5/12] (short) (narrow) %v241_v9, 32 }
  0x40   : > { %298 = vxpose.xlu1.b32.cont [6/12] (short) (narrow) %v286_v10, 32 }
  0x41   : > { %254 = vxpose.xlu0.b32.cont [6/12] (short) (narrow) %v242_v11, 32 }
  0x48   : > { %299 = vxpose.xlu1.b32.cont [7/12] (short) (narrow) %v287_v12, 32 }
  0x49   : > { %255 = vxpose.xlu0.b32.cont [7/12] (short) (narrow) %v243_v13, 32 }
  0x50   : > { %300 = vxpose.xlu1.b32.cont [8/12] (short) (narrow) %v288_v14, 32 }
  0x51   : > { %256 = vxpose.xlu0.b32.cont [8/12] (short) (narrow) %v244_v15, 32 }
  0x58   : > { %301 = vxpose.xlu1.b32.cont [9/12] (short) (narrow) %v289_v16, 32 }
  0x59   : > { %257 = vxpose.xlu0.b32.cont [9/12] (short) (narrow) %v245_v17, 32 }
  0x60   : > { %302 = vxpose.xlu1.b32.cont [10/12] (short) (narrow) %v290_v18, 32 }
  0x61   : > { %258 = vxpose.xlu0.b32.cont [10/12] (short) (narrow) %v246_v19, 32 }
  0x68   : > { %303 = vxpose.xlu1.b32.cont [11/12] (short) (narrow) %v291_v20, 32 }
  0x69   : > { %259 = vxpose.xlu0.b32.cont [11/12] (short) (narrow) %v247_v21, 32 }
  0x70   : > { %304 = vxpose.xlu1.b32.end [12/12] (short) (narrow) %v292_v22, 32 }
  0x71   : > { %260 = vxpose.xlu0.b32.end [12/12] (short) (narrow) %v248_v23, 32 }
  0xbc   : > { %v940_v24 = vpop.trf.xlu1 }
  0xbd   : > { %v942_v25 = vpop.trf.xlu0  ;;  %v363_v26 = vmul.f32 0.14285715, %v940_v24  ;;  %v364_v27 = vmul.f32 0.5, %v940_v24  ;;  %vm326_vm0 = vcmp.eq.f32.partialorder %v940_v24, 0.0 }
  0xbe   : > { %v327_v28 = vsub.f32 %v942_v25, %v940_v24  ;;  %v376_v29 = vmul.f32 0.5, %v942_v25  ;;  %v375_v31 = vmul.f32 0.14285715, %v942_v25 }
  0xbf   : > { %v366_v30 = vrot.slane %v364_v27, 2 }
  0xc0   : > { %v378_v32 = vrot.slane %v376_v29, 2  ;;  %v331_v55 = vmul.f32 %v327_v28, %v327_v28 }
  0xc1   : > { %v368_v33 = vsub.f32 %v363_v26, %v366_v30  ;;  %v369_v34 = vadd.f32 %v366_v30, %v363_v26 }
  0xc2   : > { %v380_v35 = vsub.f32 %v375_v31, %v378_v32  ;;  %v381_v36 = vadd.f32 %v378_v32, %v375_v31 }
  0xc3   : > { %v370_v37 = vsub.f32 %v369_v34, %v368_v33  ;;  %v426_v49 = vrot.slane %v369_v34, 3  ;;  %v430_v50 = vrot.slane %v368_v33, 3 }
  0xc4   : > { %v950_v38 = vpop.trf.xlu1  ;;  %v382_v39 = vsub.f32 %v381_v36, %v380_v35  ;;  %v387_v40 = vmin.f32 %v381_v36, %v369_v34  ;;  %v388_v41 = vmax.f32 %v380_v35, %v368_v33 }
  0xc5   : > { %v952_v42 = vpop.trf.xlu0  ;;  %v372_v43 = vrot.slane %v370_v37, 1  ;;  %v428_v58 = vmin.f32 %v381_v36, %v426_v49  ;;  %v432_v59 = vmax.f32 %v380_v35, %v430_v50 }
  0xc6   : > { %v384_v44 = vrot.slane %v382_v39, 1  ;;  %v389_v45 = vsub.f32 %v387_v40, %v388_v41  ;;  %v328_v46 = vsub.f32 %v952_v42, %v950_v38  ;;  %v414_v47 = vmul.f32 0.5, %v952_v42 }
  0xc7   : > { %v374_v48 = vmul.f32 %v372_v43, %v370_v37  ;;  %v433_v6 = vsub.f32 %v428_v58, %v432_v59  ;;  %v482_v59 = vrot.slane %v940_v24, 3 }
  0xc8   : > { %v386_v51 = vmul.f32 %v384_v44, %v382_v39  ;;  %v390_v52 = vmax.f32 %v389_v45, 0.0  ;;  %v957_v53 = vmul.f32 %v328_v46, %v328_v46  ;;  %v416_v54 = vrot.slane %v414_v47, 2 }
  0xc9   : > { %v434_v12 = vmax.f32 %v433_v6, 0.0  ;;  %v444_v13 = vrot.slane %v374_v48, 3 }
  0xca   : > { %v392_v56 = vrot.slane %v390_v52, 1  ;;  %v336_v57 = vrot.slane %v957_v53, 5  ;;  %v418_v60 = vsub.f32 %v375_v31, %v416_v54  ;;  %v419_v61 = vadd.f32 %v416_v54, %v375_v31 }
  0xcb   : > { %v395_v63 = vadd.f32 %v386_v51, %v374_v48 }
  0xcc   : > { %v394_v62 = vmul.f32 %v392_v56, %v390_v52  ;;  %v338_v0 = vadd.f32 %v336_v57, %v331_v55  ;;  %v420_v1 = vsub.f32 %v419_v61, %v418_v60  ;;  %v435_v2 = vmin.f32 %v419_v61, %v426_v49  ;;  %v311_v21 = vpop.trf.xlu1 }
  0xcd   : > { %v436_v3 = vmax.f32 %v418_v60, %v430_v50  ;;  %v267_v22 = vpop.trf.xlu0  ;;  %v833_v55 = vmov 0   ;;  %v477_v60 = vrot.slane %v942_v25, 3 }
  0xce   : > { %v396_v4 = vsub.f32 %v395_v63, %v394_v62  ;;  %v961_v5 = vsel %vm326_vm0, %v338_v0, 0.0  ;;  %v422_v7 = vrot.slane %v420_v1, 1  ;;  %v329_v47 = vsub.f32 %v267_v22, %v311_v21 }
  0xcf   : > { %v437_v8 = vsub.f32 %v435_v2, %v436_v3 }
  0xd0   : > { %vm397_vm1 = vcmp.gt.f32.partialorder %v396_v4, 0.0  ;;  %v424_v10 = vmul.f32 %v422_v7, %v382_v39  ;;  %v333_v54 = vmul.f32 %v329_v47, %v329_v47 }
  0xd1   : > { %v398_v9 = vsel %vm397_vm1, %v396_v4, 1.0  ;;  %v438_v11 = vmax.f32 %v437_v8, 0.0 }
  0xd2   : > { %741 = vrcp.f32 %v398_v9  ;;  %v446_v16 = vadd.f32 %v444_v13, %v424_v10  ;;  %v410_v28 = vand.u32 2147483648, %v398_v9  ;;  %vm404_vm4 = vweird.f32 %v398_v9 }
  0xd3   : > { %v440_v14 = vrot.slane %v438_v11, 1  ;;  %v408_v29 = vand.u32 2147483647, %v398_v9  ;;  %v343_v61 = vrot.slane %v333_v54, 2 }
  0xd4   : > { %v411_v33 = vor.u32 1.1754944e-38, %v410_v28  ;;  %v312_v35 = vpop.trf.xlu1 }
  0xd5   : > { %v442_v15 = vmul.f32 %v440_v14, %v434_v12  ;;  %vm409_vm6 = vcmp.eq.f32.partialorder %v408_v29, 8.507059e+37  ;;  %v268_v36 = vpop.trf.xlu0 }
  0xd6   : > { %v330_v43 = vsub.f32 %v268_v36, %v312_v35 }
  0xd7   : > { %v447_v17 = vsub.f32 %v446_v16, %v442_v15 }
  0xd8   : > { %v742_v18 = vpop.eup %741  ;;  %v334_v50 = vmul.f32 %v330_v43, %v330_v43 }
  0xd9   : > { %v400_v19 = vmul.f32 %v742_v18, %v398_v9  ;;  %vm448_vm2 = vcmp.gt.f32.partialorder %v447_v17, 0.0  ;;  %vm405_vm3 = vweird.f32 %v742_v18 }
  0xda   : > { %v449_v20 = vsel %vm448_vm2, %v447_v17, 1.0  ;;  %vm406_vm5 = vmor %vm404_vm4, %vm405_vm3  ;;  %v345_v57 = vrot.slane %v334_v50, 2  ;;  %vm235_vm2 = vcmask 778240  }
  0xdb   : > { %v401_v23 = vsub.f32 1.0, %v400_v19  ;;  %743 = vrcp.f32 %v449_v20  ;;  %v461_v39 = vand.u32 2147483648, %v449_v20  ;;  %v459_v41 = vand.u32 2147483647, %v449_v20 }
  0xdc   : > { %vm455_vm8 = vweird.f32 %v449_v20  ;;  %v346_v2 = vsel %vm341_vm13, %v343_v61, %v345_v57  ;;  %v355_v7 = vsel %vm354_vm15, %v345_v57, 0.0 }
  0xdd   : > { %v402_v26 = vmul.f32 %v742_v18, %v401_v23  ;;  %v462_v46 = vor.u32 1.1754944e-38, %v461_v39  ;;  %vm460_vm10 = vcmp.eq.f32.partialorder %v459_v41, 8.507059e+37  ;;  %v834_v39 = vmov 0.0  }
  0xde   : > { %236 = vst.msk [vmem:[%s995_s4] sm:$0x1] %vm235_vm2, %v834_v39 }
  0xdf   : > { %v403_v27 = vadd.f32 %v742_v18, %v402_v26 }
  0xe1   : > { %v744_v30 = vpop.eup %743  ;;  %v407_v31 = vsel %vm406_vm5, %v742_v18, %v403_v27 }
  0xe2   : > { %v451_v32 = vmul.f32 %v744_v30, %v449_v20  ;;  %v412_v37 = vsel %vm409_vm6, %v411_v33, %v407_v31  ;;  %vm456_vm7 = vweird.f32 %v744_v30 }
  0xe3   : > { %v413_v44 = vmul.f32 %v412_v37, %v394_v62  ;;  %vm457_vm9 = vmor %vm455_vm8, %vm456_vm7  ;;  %v342_v62 = vrot.slane %v957_v53, 2 }
  0xe4   : > { %v452_v34 = vsub.f32 1.0, %v451_v32 }
  0xe5   : > { %v466_v51 = vrot.slane %v413_v44, 3  ;;  %v344_v53 = vsel %vm341_vm13, %v342_v62, %v343_v61 }
  0xe6   : > { %v453_v40 = vmul.f32 %v744_v30, %v452_v34 }
  0xe8   : > { %v454_v45 = vadd.f32 %v744_v30, %v453_v40 }
  0xea   : > { %v458_v48 = vsel %vm457_vm9, %v744_v30, %v454_v45  ;;  %vm325_vm9 = vcmp.gt.f32.partialorder %v940_v24, 0.0 }
  0xeb   : > { %v463_v49 = vsel %vm460_vm10, %v462_v46, %v458_v48 }
  0xec   : > { %v464_v52 = vmul.f32 %v463_v49, %v442_v15 }
  0xee   : > { %vm468_vm11 = vcmp.gt.f32.partialorder %v464_v52, %v466_v51  ;;  %v470_v15 = vrot.slane %v464_v52, 5 }
  0xef   : > { %v473_v56 = vsel %vm468_vm11, 1, %v833_v55 }
  0xf0   : > { %v474_v58 = vperm.slane %v473_v56, 5  ;;  %v472_v27 = vmax.f32 %v413_v44, %v470_v15 }
  0xf2   : > { %vm475_vm12 = vcmp.eq.s32.totalorder %v474_v58, 1  ;;  %v549_v58 = vrot.slane %v472_v27, 7 }
  0xf3   : > { %v967_v63 = vsel %vm475_vm12, %v942_v25, %v477_v60  ;;  %v970_v0 = vsel %vm475_vm12, %v952_v42, %v477_v60  ;;  %v973_v1 = vsel %vm475_vm12, %v940_v24, %v482_v59  ;;  %v976_v3 = vsel %vm475_vm12, %v950_v38, %v482_v59 }
  0xf4   : > { %745 = vrsqrt.f32 %v967_v63  ;;  %v352_v25 = vsel %vm350_vm14, %v346_v2, 0.0  ;;  %v351_v42 = vsel %vm350_vm14, %v344_v53, 0.0  ;;  %vm511_vm0 = vcmp.eq.f32.partialorder %v970_v0, inf }
  0xf5   : > { %747 = vrsqrt.f32 %v970_v0  ;;  %v353_v4 = vadd.f32 %v352_v25, %v351_v42  ;;  %vm513_vm1 = vcmp.eq.f32.partialorder %v970_v0, 0.0  ;;  %v514_v31 = vand.u32 2147483648, %v970_v0 }
  0xf6   : > { %749 = vrsqrt.f32 %v973_v1  ;;  %vm535_vm3 = vcmp.eq.f32.partialorder %v976_v3, inf  ;;  %v538_v37 = vand.u32 2147483648, %v976_v3  ;;  %v486_v43 = vsub.f32 %v967_v63, %v973_v1 }
  0xf7   : > { %751 = vrsqrt.f32 %v976_v3  ;;  %v356_v14 = vadd.f32 %v355_v7, %v353_v4  ;;  %vm499_vm4 = vcmp.eq.f32.partialorder %v967_v63, inf  ;;  %vm501_vm5 = vcmp.eq.f32.partialorder %v967_v63, 0.0 }
  0xf8   : > { %v502_v46 = vand.u32 2147483648, %v967_v63  ;;  %vm523_vm6 = vcmp.eq.f32.partialorder %v973_v1, inf  ;;  %v526_v49 = vand.u32 2147483648, %v973_v1  ;;  %vm525_vm7 = vcmp.eq.f32.partialorder %v973_v1, 0.0 }
  0xf9   : > { %v357_v26 = vrot.slane %v356_v14, 4  ;;  %vm537_vm8 = vcmp.eq.f32.partialorder %v976_v3, 0.0  ;;  %v487_v59 = vmul.f32 %v486_v43, %v486_v43 }
  0xfa   : > { %v746_v6 = vpop.eup %745 }
  0xfb   : > { %v748_v8 = vpop.eup %747  ;;  %v493_v38 = vmul.f32 %v746_v6, %v967_v63  ;;  %v358_v56 = vadd.f32 %v357_v26, %v356_v14  ;;  %v489_v2 = vrot.slane %v487_v59, 1 }
  0xfc   : > { %v750_v9 = vpop.eup %749  ;;  %v505_v10 = vmul.f32 %v748_v8, %v970_v0 }
  0xfd   : > { %v752_v11 = vpop.eup %751  ;;  %v494_v12 = vmul.f32 %v746_v6, %v493_v38  ;;  %v517_v13 = vmul.f32 %v750_v9, %v973_v1 }
  0xfe   : > { %v506_v16 = vmul.f32 %v748_v8, %v505_v10  ;;  %v529_v17 = vmul.f32 %v752_v11, %v976_v3 }
  0xff   : > { %v495_v18 = vmul.f32 0.5, %v494_v12  ;;  %v518_v19 = vmul.f32 %v750_v9, %v517_v13  ;;  %v574_v13 = vstv %s571_s5 }
 0x100   : > { %v507_v20 = vmul.f32 0.5, %v506_v16  ;;  %v530_v21 = vmul.f32 %v752_v11, %v529_v17 }
 0x101   : > { %v496_v22 = vsub.f32 1.5, %v495_v18  ;;  %v519_v23 = vmul.f32 0.5, %v518_v19  ;;  %v568_v18 = vmul.f32 0.5, %v961_v5 }
 0x102   : > { %v508_v28 = vsub.f32 1.5, %v507_v20  ;;  %v531_v29 = vmul.f32 0.5, %v530_v21 }
 0x103   : > { %v497_v30 = vmul.f32 %v746_v6, %v496_v22  ;;  %v520_v32 = vsub.f32 1.5, %v519_v23  ;;  %v491_v6 = vadd.f32 %v489_v2, %v487_v59  ;;  %v577_v22 = vld [vmem:[%s995_s4] sm:$0x1] }
 0x104   : > { %v509_v33 = vmul.f32 %v748_v8, %v508_v28  ;;  %v532_v34 = vsub.f32 1.5, %v531_v29  ;;  %v572_v8 = vlaneseq }
 0x105   : > { %v498_v35 = vmul.f32 %v497_v30, %v967_v63  ;;  %v521_v36 = vmul.f32 %v750_v9, %v520_v32 }
 0x106   : > { %v510_v40 = vmul.f32 %v509_v33, %v970_v0  ;;  %v533_v41 = vmul.f32 %v752_v11, %v532_v34  ;;  %v573_v12 = vand.u32 127, %v572_v8 }
 0x107   : > { %v522_v44 = vmul.f32 %v521_v36, %v973_v1  ;;  %v500_v45 = vsel %vm499_vm4, %v967_v63, %v498_v35  ;;  %v359_v63 = vrot.slane %v358_v56, 2 }
 0x108   : > { %v512_v47 = vsel %vm511_vm0, %v970_v0, %v510_v40  ;;  %v534_v48 = vmul.f32 %v533_v41, %v976_v3  ;;  %v503_v51 = vsel %vm501_vm5, %v502_v46, %v500_v45  ;;  %v575_v16 = vadd.s32 %v574_v13, %v573_v12 }
 0x109   : > { %v515_v50 = vsel %vm513_vm1, %v514_v31, %v512_v47  ;;  %v524_v52 = vsel %vm523_vm6, %v973_v1, %v522_v44  ;;  %v551_v1 = vsub.f32 %v970_v0, %v549_v58  ;;  %v360_v4 = vadd.f32 %v359_v63, %v358_v56 }
 0x10a   : > { %v536_v54 = vsel %vm535_vm3, %v976_v3, %v534_v48  ;;  %v527_v55 = vsel %vm525_vm7, %v526_v49, %v524_v52  ;;  %vm576_vm10 = vcmp.lt.s32.totalorder %v575_v16, 98 }
 0x10b   : > { %v539_v57 = vsel %vm537_vm8, %v538_v37, %v536_v54  ;;  %v540_v60 = vsub.f32 %v503_v51, %v527_v55  ;;  %v552_v7 = vmul.f32 %v551_v1, %v551_v1  ;;  %v361_v9 = vrot.slane %v360_v4, 1 }
 0x10c   : > { %v541_v61 = vsub.f32 %v515_v50, %v539_v57 }
 0x10d   : > { %v542_v53 = vmul.f32 %v540_v60, %v540_v60  ;;  %v559_v11 = vrot.slane %v552_v7, 4  ;;  %v362_v15 = vadd.f32 %v361_v9, %v360_v4 }
 0x10e   : > { %v543_v62 = vmul.f32 %v541_v61, %v541_v61 }
 0x110   : > { %v545_v25 = vrot.slane %v543_v62, 1 }
 0x112   : > { %v547_v42 = vadd.f32 %v545_v25, %v542_v53 }
 0x114   : > { %v554_v3 = vrot.slane %v547_v42, 2 }
 0x116   : > { %v556_v38 = vadd.f32 %v554_v3, %v491_v6 }
 0x118   : > { %v557_v10 = vmul.f32 5.0, %v556_v38 }
 0x11a   : > { %v561_v14 = vadd.f32 %v559_v11, %v557_v10 }
 0x11c   : > { %v562_v0 = vadd.f32 %v561_v14, %v362_v15 }
 0x11e   : > { %v564_v17 = vrot.slane %v562_v0, 1 }
 0x120   : > { %v566_v19 = vsel %vm325_vm9, %v564_v17, 0.0 }
 0x121   : > { %v569_v20 = vadd.f32 %v568_v18, %v566_v19 }
 0x123   : > { %v578_v21 = vsel %vm576_vm10, %v569_v20, 0.0 }
 0x124   : > { %580 = vst [vmem:[#allocation1] sm:$0xff] %v578_v21 }
 0x12b   : > { %v582_v23 = vld [vmem:[#allocation1 + $0x4] ss:$9 sm:$0xff] }
 0x12c   : > { %v584_v26 = vadd.f32 %v582_v23, %v577_v22 }
 0x12e   : > { %586 = vst.msk [vmem:[%s995_s4] sm:$0x1] %vm235_vm2, %v584_v26 }
 0x12f   : > { %780 = shalt.err (!%p777_p5)
}
 0x130   : > { %684 = dma.vmem_to_hbm [thread:$0]  (%p890_p4), %s599_s15, 16, %s601_s16, %s588_s18  }
 0x131 PF: > { %p690_p6 = scmp.ge.s32.totalorder %s831_s14, 2  ;;  %s612_s28 = sand.u32 1, %s811_s9  }
 0x132   : > { %s613_s29 = scalar_lea.sflag [#allocation3], %s612_s28 }
 0x133   : > { %p687_p7 = pnand %p690_p6, %p897_p8 }
 0x135   : > { %p688_p9 = pneg %p687_p7 }
 0x137   : > { %806 = dma.done.wait (%p688_p9), %s613_s29, 16  }
 0x138   : > { %808 = vsyncadd (%p688_p9), %s613_s29, 4294967280  ;;  %s15_s14 = sadd.s32 1, %s831_s14   ;;  %s1072_s9 = smov %s815_s10 }
 0x139   : > { %p12_p10 = scmp.ge.s32.totalorder %s15_s14, 4   ;;  %s1073_s10 = smov %s819_s11 }
 0x13a   : > { %s1074_s11 = smov %s903_s22  ;;  %s1075_s12 = smov %s827_s13 }
 0x13b   : > { %s1076_s13 = smov %s1078_s17  ;;  %14 = sbr.rel (!%p12_p10) target bundleno = 4 (0x4), region = 71 }
 0x140   :  { %618 = vsyncpa [#allocation3], 1 }
 0x141   :  { %620 = vsyncpa [#allocation3 + $0x1], 1 }

</bundles_post_ra>
